<compile_context>
chip_gen: v7x
topology: tpu7x:2x2x1
jax: 0.10.0
libtpu: 0.0.40
codegen_flags: <defaults>
</compile_context>

<pallas_src>
import functools

import jax
import jax.numpy as jnp
from jax import lax
from jax.experimental import pallas as pl
from jax.experimental.pallas import tpu as pltpu


def _res_conv1d_kernel(x_ref, tvec_ref, w1_ref, w2_ref, b2_ref, o_ref, hpad_ref,
                       *, dilation):
    d = dilation
    Cin, T = o_ref.shape

    xf = x_ref[...].astype(jnp.float32)                    # (Cin, T), residual kept f32
    # norm1 = Identity; SiLU.  Matmul operands in bf16, accumulation in f32.
    h = (xf * jax.nn.sigmoid(xf)).astype(jnp.bfloat16)

    # Zero-pad the time halo inside VMEM (no wrapper-side jnp.pad / transpose).
    hpad_ref[:, 0:d] = jnp.zeros((Cin, d), jnp.bfloat16)
    hpad_ref[:, d + T:d + T + d] = jnp.zeros((Cin, d), jnp.bfloat16)
    hpad_ref[:, d:d + T] = h

    # conv1 (kernel 3, dilation d): three shifted (n_state, Cin) @ (Cin, T) matmuls.
    # TODO(synk): for Cin < 128 a single fused K=3*Cin matmul has better MXU cadence.
    acc = jnp.dot(w1_ref[0], hpad_ref[:, 0:T],
                  preferred_element_type=jnp.float32)
    acc = acc + jnp.dot(w1_ref[1], hpad_ref[:, d:d + T],
                        preferred_element_type=jnp.float32)
    acc = acc + jnp.dot(w1_ref[2], hpad_ref[:, 2 * d:2 * d + T],
                        preferred_element_type=jnp.float32)

    # + conv1 bias + time_mlp(time_embed): precomputed per batch element, (n_state, 1).
    acc = acc + tvec_ref[...]

    # norm2 = Identity; SiLU; conv2 (1x1) back to Cin channels.
    h2 = (acc * jax.nn.sigmoid(acc)).astype(jnp.bfloat16)
    y = jnp.dot(w2_ref[...], h2, preferred_element_type=jnp.float32) + b2_ref[...]

    # TODO(synk): nn.Dropout(0.2) is treated as inference-mode identity here.
    o_ref[...] = (y + xf).astype(o_ref.dtype)


def res_conv1d_block(x, time_embed, params, *, dilation=1):
    """x: (B, n_in, T) (PyTorch NCL).  time_embed: (B, time_dim).  Returns (B, n_in, T)."""
    w_conv1, b_conv1, w_time, b_time, w_conv2, b_conv2 = params
    B, Cin, T = x.shape
    n_state = w_conv1.shape[0]
    d = dilation

    # Precompute time_mlp(time_embed) + conv1 bias outside the kernel: (B, n_state, 1).
    tvec = (time_embed.astype(jnp.float32) @ w_time.T.astype(jnp.float32)
            + b_time + b_conv1)[:, :, None].astype(jnp.float32)

    # MXU-friendly weight layouts, bf16 operands (f32 accumulation in-kernel).
    w1 = jnp.transpose(w_conv1, (2, 0, 1)).astype(jnp.bfloat16)     # (3, n_state, Cin)
    w2 = w_conv2[:, :, 0].astype(jnp.bfloat16)                      # (Cin, n_state)
    b2 = b_conv2.astype(jnp.float32)[:, None]                       # (Cin, 1)

    # VMEM budget: double-buffered x/out blocks + bf16 scratch + weights (+ headroom).
    vmem_bytes = (2 * Cin * T * 4                        # x blocks (double-buffered)
                  + 2 * Cin * T * 4                      # out blocks
                  + Cin * (T + 2 * d) * 2                # padded bf16 scratch
                  + 2 * (3 * n_state * Cin + Cin * n_state) * 2   # w1, w2
                  + 2 * (n_state + Cin) * 4)             # tvec, b2
    vmem_limit = int(min(64 << 20, max(16 << 20, 2 * vmem_bytes)))

    # TODO(synk): for very long T, add a halo-aware time-tile grid axis (bounds VMEM on
    # v7x's 64 MiB and feeds both of its TensorCores); typical MLD lengths fit one slab.
    return pl.pallas_call(
        functools.partial(_res_conv1d_kernel, dilation=d),
        out_shape=jax.ShapeDtypeStruct((B, Cin, T), x.dtype),
        grid=(B,),
        in_specs=[
            pl.BlockSpec((pl.Squeezed(), Cin, T), lambda b: (b, 0, 0)),       # x (NCL)
            pl.BlockSpec((pl.Squeezed(), n_state, 1), lambda b: (b, 0, 0)),   # tvec
            pl.BlockSpec((3, n_state, Cin), lambda b: (0, 0, 0)),             # w1
            pl.BlockSpec((Cin, n_state), lambda b: (0, 0)),                   # w2
            pl.BlockSpec((Cin, 1), lambda b: (0, 0)),                         # b2
        ],
        out_specs=pl.BlockSpec((pl.Squeezed(), Cin, T), lambda b: (b, 0, 0)),
        scratch_shapes=[pltpu.VMEM((Cin, T + 2 * d), jnp.bfloat16)],
        compiler_params=pltpu.CompilerParams(
            dimension_semantics=("parallel",),
            vmem_limit_bytes=vmem_limit),
    )(x, tvec, w1, w2, b2)


def ref_forward(x, time_embed, params, *, dilation=1):
    """Pure-JAX reference matching the PyTorch forward (eval mode, norm=None, silu)."""
    w_conv1, b_conv1, w_time, b_time, w_conv2, b_conv2 = params
    h = jax.nn.silu(x)
    h = lax.conv_general_dilated(
        h, w_conv1, window_strides=(1,), padding=[(dilation, dilation)],
        rhs_dilation=(dilation,), dimension_numbers=("NCH", "OIH", "NCH"))
    h = h + b_conv1[None, :, None]
    tvec = time_embed @ w_time.T + b_time
    h = h + tvec[:, :, None]
    h = jax.nn.silu(h)
    h = lax.conv_general_dilated(
        h, w_conv2, window_strides=(1,), padding=[(0, 0)],
        dimension_numbers=("NCH", "OIH", "NCH"))
    h = h + b_conv2[None, :, None]
    return h + x


if __name__ == "__main__":
    B, n_in, n_state, T, time_dim, dilation = 2, 8, 16, 16, 32, 1

    key = jax.random.PRNGKey(0)
    kx, kt, k1, kb1, kw, kbw, k2, kb2 = jax.random.split(key, 8)

    x = jax.random.normal(kx, (B, n_in, T), jnp.float32)
    time_embed = jax.random.normal(kt, (B, time_dim), jnp.float32)

    # Parameter shapes per __init__.  time_mlp is zero-initialized in the module; small
    # random values are used here so the (precomputed) time path is actually exercised.
    w_conv1 = 0.1 * jax.random.normal(k1, (n_state, n_in, 3), jnp.float32)
    b_conv1 = 0.1 * jax.random.normal(kb1, (n_state,), jnp.float32)
    w_time = 0.05 * jax.random.normal(kw, (n_state, time_dim), jnp.float32)
    b_time = 0.05 * jax.random.normal(kbw, (n_state,), jnp.float32)
    w_conv2 = 0.1 * jax.random.normal(k2, (n_in, n_state, 1), jnp.float32)
    b_conv2 = 0.1 * jax.random.normal(kb2, (n_in,), jnp.float32)
    params = (w_conv1, b_conv1, w_time, b_time, w_conv2, b_conv2)

    out = res_conv1d_block(x, time_embed, params, dilation=dilation)
    out = jax.block_until_ready(out)

    ref = ref_forward(x, time_embed, params, dilation=dilation)
    assert out.shape == (B, n_in, T)
    # bf16 matmul operands with f32 accumulation -> tolerance looser than pure f32.
    max_err = float(jnp.max(jnp.abs(out - ref)))
    assert jnp.allclose(out, ref, atol=2e-2, rtol=2e-2), max_err

    print("KERNEL_OK")
</pallas_src>

<mosaic_0001>
module attributes {stable_mosaic.version = 11 : i64} {
  func.func @_res_conv1d_kernel(%arg0: i32, %arg1: memref<1x8x16xf32, #tpu.memory_space<vmem>>, %arg2: memref<1x16x1xf32, #tpu.memory_space<vmem>>, %arg3: memref<3x16x8xbf16, #tpu.memory_space<vmem>>, %arg4: memref<8x16xbf16, #tpu.memory_space<vmem>>, %arg5: memref<8x1xf32, #tpu.memory_space<vmem>>, %arg6: memref<1x8x16xf32, #tpu.memory_space<vmem>>, %arg7: memref<8x18xbf16, #tpu.memory_space<vmem>>) attributes {dimension_semantics = [#tpu.dimension_semantics<parallel>], iteration_bounds = array<i64: 2>, scalar_prefetch = 0 : i64, scratch_operands = 1 : i64, tpu.core_type = #tpu.core_type<tc>, window_params = [{transform_indices = @transform_0, window_bounds = array<i64: 1, 8, 16>}, {transform_indices = @transform_1, window_bounds = array<i64: 1, 16, 1>}, {pipeline_mode = #tpu.pipeline_mode<synchronous>, transform_indices = @transform_2, window_bounds = array<i64: 3, 16, 8>}, {pipeline_mode = #tpu.pipeline_mode<synchronous>, transform_indices = @transform_3, window_bounds = array<i64: 8, 16>}, {pipeline_mode = #tpu.pipeline_mode<synchronous>, transform_indices = @transform_4, window_bounds = array<i64: 8, 1>}, {transform_indices = @transform_5, window_bounds = array<i64: 1, 8, 16>}]} {
    %c0 = arith.constant 0 : index
    %c0_0 = arith.constant 0 : index
    %c0_1 = arith.constant 0 : index
    %0 = vector.load %arg1[%c0, %c0_0, %c0_1] : memref<1x8x16xf32, #tpu.memory_space<vmem>>, vector<1x8x16xf32>
    %1 = vector.shape_cast %0 : vector<1x8x16xf32> to vector<8x16xf32>
    %2 = arith.negf %1 : vector<8x16xf32>
    %3 = math.exp %2 : vector<8x16xf32>
    %cst = arith.constant 1.000000e+00 : f32
    %4 = vector.broadcast %cst : f32 to vector<8x16xf32>
    %5 = arith.addf %4, %3 : vector<8x16xf32>
    %6 = arith.divf %4, %5 : vector<8x16xf32>
    %7 = arith.mulf %1, %6 : vector<8x16xf32>
    %8 = arith.truncf %7 : vector<8x16xf32> to vector<8x16xbf16>
    %cst_2 = arith.constant 0.000000e+00 : bf16
    %9 = vector.broadcast %cst_2 : bf16 to vector<8x1xbf16>
    %c0_3 = arith.constant 0 : index
    %c0_4 = arith.constant 0 : index
    %10 = vector.load %arg7[%c0_3, %c0_4] : memref<8x18xbf16, #tpu.memory_space<vmem>>, vector<8x1xbf16>
    tpu.vector_store %arg7[%c0_3, %c0_4], %9 {strides = array<i32>} : memref<8x18xbf16, #tpu.memory_space<vmem>>, vector<8x1xbf16>,
    %cst_5 = arith.constant 0.000000e+00 : bf16
    %11 = vector.broadcast %cst_5 : bf16 to vector<8x1xbf16>
    %c0_6 = arith.constant 0 : index
    %c17 = arith.constant 17 : index
    %12 = vector.load %arg7[%c0_6, %c17] : memref<8x18xbf16, #tpu.memory_space<vmem>>, vector<8x1xbf16>
    tpu.vector_store %arg7[%c0_6, %c17], %11 {strides = array<i32>} : memref<8x18xbf16, #tpu.memory_space<vmem>>, vector<8x1xbf16>,
    %c0_7 = arith.constant 0 : index
    %c1 = arith.constant 1 : index
    %13 = vector.load %arg7[%c0_7, %c1] : memref<8x18xbf16, #tpu.memory_space<vmem>>, vector<8x16xbf16>
    tpu.vector_store %arg7[%c0_7, %c1], %8 {strides = array<i32>} : memref<8x18xbf16, #tpu.memory_space<vmem>>, vector<8x16xbf16>,
    %c0_8 = arith.constant 0 : index
    %c0_9 = arith.constant 0 : index
    %c0_10 = arith.constant 0 : index
    %14 = vector.load %arg3[%c0_8, %c0_9, %c0_10] : memref<3x16x8xbf16, #tpu.memory_space<vmem>>, vector<1x16x8xbf16>
    %15 = vector.shape_cast %14 : vector<1x16x8xbf16> to vector<16x8xbf16>
    %c0_11 = arith.constant 0 : index
    %c0_12 = arith.constant 0 : index
    %16 = vector.load %arg7[%c0_11, %c0_12] : memref<8x18xbf16, #tpu.memory_space<vmem>>, vector<8x16xbf16>
    %cst_13 = arith.constant dense<0.000000e+00> : vector<16x16xf32>
    %17 = tpu.matmul %15, %16, %cst_13 {dimension_numbers = #tpu.dot_dimension_numbers<[1], [0], [0], [1], [0, 0, 1, 1], [], []>} : vector<16x8xbf16>, vector<8x16xbf16>, vector<16x16xf32> -> vector<16x16xf32>
    %c1_14 = arith.constant 1 : index
    %c0_15 = arith.constant 0 : index
    %c0_16 = arith.constant 0 : index
    %18 = vector.load %arg3[%c1_14, %c0_15, %c0_16] : memref<3x16x8xbf16, #tpu.memory_space<vmem>>, vector<1x16x8xbf16>
    %19 = vector.shape_cast %18 : vector<1x16x8xbf16> to vector<16x8xbf16>
    %c0_17 = arith.constant 0 : index
    %c1_18 = arith.constant 1 : index
    %20 = vector.load %arg7[%c0_17, %c1_18] : memref<8x18xbf16, #tpu.memory_space<vmem>>, vector<8x16xbf16>
    %cst_19 = arith.constant dense<0.000000e+00> : vector<16x16xf32>
    %21 = tpu.matmul %19, %20, %cst_19 {dimension_numbers = #tpu.dot_dimension_numbers<[1], [0], [0], [1], [0, 0, 1, 1], [], []>} : vector<16x8xbf16>, vector<8x16xbf16>, vector<16x16xf32> -> vector<16x16xf32>
    %22 = arith.addf %17, %21 : vector<16x16xf32>
    %c2 = arith.constant 2 : index
    %c0_20 = arith.constant 0 : index
    %c0_21 = arith.constant 0 : index
    %23 = vector.load %arg3[%c2, %c0_20, %c0_21] : memref<3x16x8xbf16, #tpu.memory_space<vmem>>, vector<1x16x8xbf16>
    %24 = vector.shape_cast %23 : vector<1x16x8xbf16> to vector<16x8xbf16>
    %c0_22 = arith.constant 0 : index
    %c2_23 = arith.constant 2 : index
    %25 = vector.load %arg7[%c0_22, %c2_23] : memref<8x18xbf16, #tpu.memory_space<vmem>>, vector<8x16xbf16>
    %cst_24 = arith.constant dense<0.000000e+00> : vector<16x16xf32>
    %26 = tpu.matmul %24, %25, %cst_24 {dimension_numbers = #tpu.dot_dimension_numbers<[1], [0], [0], [1], [0, 0, 1, 1], [], []>} : vector<16x8xbf16>, vector<8x16xbf16>, vector<16x16xf32> -> vector<16x16xf32>
    %27 = arith.addf %22, %26 : vector<16x16xf32>
    %c0_25 = arith.constant 0 : index
    %c0_26 = arith.constant 0 : index
    %c0_27 = arith.constant 0 : index
    %28 = vector.load %arg2[%c0_25, %c0_26, %c0_27] : memref<1x16x1xf32, #tpu.memory_space<vmem>>, vector<1x16x1xf32>
    %29 = vector.shape_cast %28 : vector<1x16x1xf32> to vector<16x1xf32>
    %30 = vector.broadcast %29 : vector<16x1xf32> to vector<16x16xf32>
    %31 = arith.addf %27, %30 : vector<16x16xf32>
    %32 = arith.negf %31 : vector<16x16xf32>
    %33 = math.exp %32 : vector<16x16xf32>
    %cst_28 = arith.constant 1.000000e+00 : f32
    %34 = vector.broadcast %cst_28 : f32 to vector<16x16xf32>
    %35 = arith.addf %34, %33 : vector<16x16xf32>
    %36 = arith.divf %34, %35 : vector<16x16xf32>
    %37 = arith.mulf %31, %36 : vector<16x16xf32>
    %38 = arith.truncf %37 : vector<16x16xf32> to vector<16x16xbf16>
    %c0_29 = arith.constant 0 : index
    %c0_30 = arith.constant 0 : index
    %39 = vector.load %arg4[%c0_29, %c0_30] : memref<8x16xbf16, #tpu.memory_space<vmem>>, vector<8x16xbf16>
    %cst_31 = arith.constant dense<0.000000e+00> : vector<8x16xf32>
    %40 = tpu.matmul %39, %38, %cst_31 {dimension_numbers = #tpu.dot_dimension_numbers<[1], [0], [0], [1], [0, 0, 1, 1], [], []>} : vector<8x16xbf16>, vector<16x16xbf16>, vector<8x16xf32> -> vector<8x16xf32>
    %c0_32 = arith.constant 0 : index
    %c0_33 = arith.constant 0 : index
    %41 = vector.load %arg5[%c0_32, %c0_33] : memref<8x1xf32, #tpu.memory_space<vmem>>, vector<8x1xf32>
    %42 = vector.broadcast %41 : vector<8x1xf32> to vector<8x16xf32>
    %43 = arith.addf %40, %42 : vector<8x16xf32>
    %44 = arith.addf %43, %1 : vector<8x16xf32>
    %c0_34 = arith.constant 0 : index
    %c0_35 = arith.constant 0 : index
    %c0_36 = arith.constant 0 : index
    %45 = vector.load %arg6[%c0_34, %c0_35, %c0_36] : memref<1x8x16xf32, #tpu.memory_space<vmem>>, vector<1x8x16xf32>
    %46 = vector.shape_cast %45 : vector<1x8x16xf32> to vector<8x16xf32>
    %47 = vector.shape_cast %44 : vector<8x16xf32> to vector<1x8x16xf32>
    tpu.vector_store %arg6[%c0_34, %c0_35, %c0_36], %47 {strides = array<i32>} : memref<1x8x16xf32, #tpu.memory_space<vmem>>, vector<1x8x16xf32>,
    return
  }
  func.func @transform_0(%arg0: i32) -> (i32, i32, i32) {
    %c0_i32 = arith.constant 0 : i32
    %c0_i32_0 = arith.constant 0 : i32
    %c0_i32_1 = arith.constant 0 : i32
    return %arg0, %c0_i32, %c0_i32_0 : i32, i32, i32
  }
  func.func @transform_1(%arg0: i32) -> (i32, i32, i32) {
    %c0_i32 = arith.constant 0 : i32
    %c0_i32_0 = arith.constant 0 : i32
    %c0_i32_1 = arith.constant 0 : i32
    return %arg0, %c0_i32, %c0_i32_0 : i32, i32, i32
  }
  func.func @transform_2(%arg0: i32) -> (i32, i32, i32) {
    %c0_i32 = arith.constant 0 : i32
    %c0_i32_0 = arith.constant 0 : i32
    %c0_i32_1 = arith.constant 0 : i32
    %c0_i32_2 = arith.constant 0 : i32
    return %c0_i32, %c0_i32_0, %c0_i32_1 : i32, i32, i32
  }
  func.func @transform_3(%arg0: i32) -> (i32, i32) {
    %c0_i32 = arith.constant 0 : i32
    %c0_i32_0 = arith.constant 0 : i32
    %c0_i32_1 = arith.constant 0 : i32
    return %c0_i32, %c0_i32_0 : i32, i32
  }
  func.func @transform_4(%arg0: i32) -> (i32, i32) {
    %c0_i32 = arith.constant 0 : i32
    %c0_i32_0 = arith.constant 0 : i32
    %c0_i32_1 = arith.constant 0 : i32
    return %c0_i32, %c0_i32_0 : i32, i32
  }
  func.func @transform_5(%arg0: i32) -> (i32, i32, i32) {
    %c0_i32 = arith.constant 0 : i32
    %c0_i32_0 = arith.constant 0 : i32
    %c0_i32_1 = arith.constant 0 : i32
    return %arg0, %c0_i32, %c0_i32_0 : i32, i32, i32
  }
}

</mosaic_0001>

<bundles_post_ra>
// kernel: tpu_custom_call.1
= control target key start
LH: loop header
LB: loop body
LE: loop exit
PB: predicated region body
PF: predicated region fallthrough
CT: control target
= control target key end

     0   :  { %10 = vsyncpa [#allocation4], 0  ;;  %s970_s0 = inlined_call_operand.vmem [shape: f32[2,8,16], index: 0, kind: input, shape index: {}]   ;;  %s971_s1 = inlined_call_operand.vmem [shape: f32[2,16,1], index: 1, kind: input, shape index: {}]   ;;  %s972_s2 = inlined_call_operand.vmem [shape: bf16[3,16,8], index: 2, kind: input, shape index: {}]   ;;  %s973_s3 = inlined_call_operand.vmem [shape: bf16[8,16], index: 3, kind: input, shape index: {}]   ;;  %s974_s4 = inlined_call_operand.vmem [shape: f32[8,1], index: 4, kind: input, shape index: {}]   ;;  %s975_s5 = inlined_call_operand.hbm [shape: f32[2,8,16], index: 5, kind: output, shape index: {}]  }
   0x1   :  { %12 = vsyncpa [#allocation4 + $0x1], 0  ;;  %s831_s18 = smov 0   ;;  %s833_s19 = smov 0  }
   0x2   :  { %s835_s20 = smov 0   ;;  %s837_s21 = smov 0  }
   0x3 LB: > { %s852_s22 = sadd.s32 4294967295, %s792_s21   ;;  %s605_s23 = sadd.s32 4294967294, %s792_s21   ;;  %s792_s21 = sphi %s837_s21, %s981_s21   ;;  %s788_s20 = sphi %s835_s20, %s980_s20   ;;  %s784_s19 = sphi %s833_s19, %s979_s19   ;;  %s780_s18 = sphi %s831_s18, %s978_s18  }
   0x4   : > { %s856_s24 = sadd.s32 1, %s792_s21   ;;  %s140_s25 = sadd.s32 1, %s788_s20 }
   0x5   : > { %s137_s26 = ssub.s32 %s792_s21, %s856_s24  ;;  %p150_p0 = scmp.ne.s32.totalorder %s788_s20, %s784_s19 }
   0x6   : > { %p138_p1 = scmp.eq.s32.totalorder %s137_s26, 0  ;;  %p151_p2 = scmp.eq.s32.totalorder %s852_s22, 1 }
   0x7   : > { %p156_p3 = scmp.ne.s32.totalorder %s784_s19, %s780_s18  ;;  %p157_p4 = scmp.eq.s32.totalorder %s605_s23, 1 }
   0x8   : > { %s867_s27 = scalar_select %p138_p1, %s788_s20, %s140_s25  }
   0x9   : > { %p869_p5 = por %p151_p2, %p150_p0  ;;  %p873_p6 = por %p157_p4, %p156_p3 }
   0xa   : > { %p608_p7 = scmp.ge.s32.totalorder %s792_s21, 1  ;;  %p199_p8 = scmp.lt.s32.totalorder %s792_s21, 3 }
   0xc   : > { %p200_p9 = pnand %p608_p7, %p199_p8 }
   0xd   : > { %p231_p10 = scmp.lt.s32.totalorder (!%p200_p9), %s852_s22, 1  ;;  %vm250_vm0 = vcmask (!%p200_p9), 3072   ;;  %vm252_vm1 = vcmask (!%p200_p9), 142472   ;;  %v794_v0 = vmov (!%p200_p9), 0   ;;  %v795_v5 = vmov (!%p200_p9), 0.0   ;;  %s796_s10 = smov (!%p200_p9), 1  }
   0xe   : > { %203 = sbr.rel (%p200_p9) target bundleno = 789 (0x315), region = 40  ;;  %251 = vst.msk [vmem:[#allocation2] sm:$0xf] (!%p200_p9), %vm250_vm0, %v794_v0  ;;  %712 = vset.pattern.permute.xlu1 (!%p200_p9), %v794_v0  ;;  %713 = vset.pattern.permute.xlu0 (!%p200_p9), %v794_v0  ;;  %vm260_vm2 = vcmask (!%p200_p9), 134152   ;;  %vm797_vm3 = vmmov (!%p200_p9), 0   ;;  %vm282_vm4 = vcmask (!%p200_p9), 1043456  }
   0xf   : > { %253 = vst.msk [vmem:[#allocation2] sm:$0xf] (!%p200_p9), %vm252_vm1, %v794_v0  ;;  %649 = vmatprep.subr.bf16.mxu1 (!%p200_p9), %v795_v5  ;;  %643 = vmatprep.subr.bf16.mxu0 (!%p200_p9), %v795_v5  ;;  %v716_v13 = vld [vmem:[%s972_s2] sm:$0xff] (!%p200_p9)   ;;  %vm278_vm5 = vcmask (!%p200_p9), 64512   ;;  %s798_s14 = smov (!%p200_p9), 126   ;;  %s799_s15 = smov (!%p200_p9), 127  }
  0x10   : > { %645 = vmatprep.mubr.msk.bf16.mxu0 (!%p200_p9), %vm797_vm3, %v795_v5  ;;  %651 = vmatprep.mubr.msk.bf16.mxu1 (!%p200_p9), %vm797_vm3, %v795_v5  ;;  %v468_v16 = vld [vmem:[%s974_s4] sm:$0xff] (!%p200_p9)  ;;  %v715_v19 = vld [vmem:[%s972_s2 + $0x8] sm:$0xff] (!%p200_p9)   ;;  %v717_v22 = vld [vmem:[%s972_s2 + $0x10] sm:$0xff] (!%p200_p9)   ;;  %vm474_vm6 = vcmask (!%p200_p9), 130048   ;;  %s228_s11 = sand.u32 (!%p200_p9), 1, %s784_s19   ;;  %s800_s26 = smov (!%p200_p9), [#allocation3]  }
  0x11   : > { %v467_v54 = vld [vmem:[%s973_s3] sm:$0xf] (!%p200_p9)  ;;  %s609_s12 = sshll.u32 (!%p200_p9), %s228_s11, 3 }
  0x15   : > { %s881_s30 = scalar_select %p231_p10, %s852_s22, 1 }
  0x17   : > { %s610_s6 = sshll.u32 %s881_s30, 3  ;;  %s633_s13 = sshll.u32 %s881_s30, 4 }
  0x18   : > { %s234_s9 = scalar_lea.vmem %s970_s0, %s610_s6  ;;  %s239_s23 = scalar_lea.vmem %s971_s1, %s633_s13 }
  0x19   : > { %v887_v1 = vld [vmem:[%s234_s9] sm:$0xff]  ;;  %v439_v15 = vld [vmem:[%s239_s23 + $0x8] sm:$0xff]  ;;  %s630_s13 = sshll.u32 %s852_s22, 7  ;;  %s521_s22 = scalar_lea.sflag [#allocation4], %s228_s11 }
  0x1a   : > { %v613_v2 = vmul.f32 -1.442695, %v887_v1  ;;  %v438_v14 = vld [vmem:[%s239_s23] sm:$0xff]  ;;  %s927_s23 = scalar_lea.hbm %s975_s5, %s630_s13  ;;  %s734_s30 = sshll.u32 %s800_s26, 4  ;;  %s735_s30 = int_to_ptr.vmem [resolvable:$false] %s734_s30 }
  0x1b   : > { %s736_s6 = scalar_lea.vmem %s735_s30, 256 }
  0x1c   : > { %718 = vpow2.f32 %v613_v2 }
  0x26   : > { %v719_v3 = vpop.eup %718 }
  0x27   : > { %v245_v4 = vadd.f32 1.0, %v719_v3 }
  0x29   : > { %720 = vrcp.f32 %v245_v4 }
  0x33   : > { %v721_v6 = vpop.eup %720 }
  0x34   : > { %v248_v7 = vmul.f32 %v721_v6, %v887_v1 }
  0x36   : > { %v634_v8 = vpack.c.bf16 %v248_v7, %v248_v7 }
  0x38   : > { %257 = vrot.lane.b32.xlu0 %v634_v8, %s796_s10 }
  0xaa   : > { %v258_v9 = vpop.permute.xlu0 %257 }
  0xab   : > { %261 = vst.msk [vmem:[#allocation2] sm:$0xf] %vm260_vm2, %v258_v9 }
  0xb2   : > { %v264_v10 = vld [vmem:[#allocation2] sm:$0xf] }
  0xb3   : > { %v336_v11 = vsel %vm282_vm4, %v264_v10, 0  ;;  %v618_v12 = vcombine.low %v264_v10, %v264_v10 }
  0xb4   : > { %650 = vmatpush3.bf16.msra.mxu1 %v336_v11 }
  0xb5   : > { %387 = vrot.lane.b32.xlu1 %v618_v12, %s798_s14  ;;  %276 = vrot.lane.b32.xlu0 %v618_v12, %s799_s15  ;;  %s230_s14 = scalar_lea.vmem [#allocation3], %s609_s12 }
  0xb6   : > { %661 = vmatprep.subr.bf16.mxu1 %v795_v5  ;;  %s534_s15 = sshll.u32 %s230_s14, 4  ;;  %s929_s15 = int_to_ptr.vmem [resolvable:$true] %s534_s15 }
  0xb7   : > { %652 = vmatmul.mubr.msk.bf16.vlgmr.msra.gmra.mrb[0].mxu1 %vm278_vm5, %v716_v13  ;;  %s730_s25 = scalar_lea.vmem %s929_s15, 128  ;;  %p737_p0 = scmp.lt.s32.totalorder %s929_s15, %s735_s30 }
  0xb8   : > { %663 = vmatprep.mubr.msk.bf16.mxu1 %vm797_vm3, %v795_v5  ;;  %p731_p11 = scmp.ne.s32.totalorder %s929_s15, %s730_s25  ;;  %p738_p1 = scmp.lt.s32.totalorder %s736_s6, %s730_s25 }
  0xb9   : > { %442 = vperm.xlu1 %712, %v438_v14   ;;  %447 = vperm.xlu0 %713, %v439_v15  }
  0xba   : > { %p732_p12 = pnand %p731_p11, %p869_p5  ;;  %p739_p2 = por %p738_p1, %p737_p0 }
  0xbc   : > { %p733_p13 = pneg %p732_p12 }
  0xbd   : > { %471 = vperm.xlu1 %712, %v468_v16  }
  0xbe   : > { %p740_p3 = pnand %p739_p2, %p733_p13 }
 0x127   : > { %v277_v17 = vpop.permute.xlu0 %276  ;;  %v388_v20 = vpop.permute.xlu1 %387 }
 0x128   : > { %v284_v18 = vsel %vm282_vm4, %v277_v17, 0  ;;  %v393_v21 = vsel %vm282_vm4, %v388_v20, 0 }
 0x129   : > { %644 = vmatpush3.bf16.msra.mxu0 %v284_v18 }
 0x12a   : > { %655 = vmatprep.subr.bf16.mxu0 %v795_v5 }
 0x12c   : > { %646 = vmatmul.mubr.msk.bf16.vlgmr.msra.gmra.mrb[0].mxu0 %vm278_vm5, %v715_v19 }
 0x12d   : > { %656 = vmatpush3.bf16.msra.mxu0 %v393_v21  ;;  %657 = vmatprep.mubr.msk.bf16.mxu0 %vm797_vm3, %v795_v5 }
 0x134   : > { %658 = vmatmul.mubr.msk.bf16.vlgmr.msra.gmra.mrb[4].mxu0 %vm278_vm5, %v717_v22 }
 0x138   : > { %v443_v34 = vpop.permute.xlu1 %442  ;;  %v448_v38 = vpop.permute.xlu0 %447 }
 0x13c   : > { %v472_v55 = vpop.permute.xlu1 %471 }
 0x18a   : > { %v372_v23 = vpop.f32.mrb[0].mxu1 }
 0x18b   : > { %v653_v24 = vpop.f32.mrb[1].mxu1 }
 0x18c   : > { %v375_v25 = vpop.f32.mrb[2].mxu1 }
 0x18d   : > { %v654_v26 = vpop.f32.mrb[3].mxu1 }
 0x1ff   : > { %v320_v27 = vpop.f32.mrb[0].mxu0 }
 0x200   : > { %v373_v28 = vadd.f32 %v372_v23, %v320_v27  ;;  %v647_v29 = vpop.f32.mrb[1].mxu0 }
 0x201   : > { %v323_v30 = vpop.f32.mrb[2].mxu0 }
 0x202   : > { %v376_v31 = vadd.f32 %v375_v25, %v323_v30  ;;  %v648_v32 = vpop.f32.mrb[3].mxu0 }
 0x207   : > { %v429_v33 = vpop.f32.mrb[4].mxu0 }
 0x208   : > { %v436_v35 = vadd.f32 %v429_v33, %v373_v28  ;;  %v659_v36 = vpop.f32.mrb[5].mxu0 }
 0x209   : > { %v432_v37 = vpop.f32.mrb[6].mxu0 }
 0x20a   : > { %v450_v39 = vadd.f32 %v443_v34, %v436_v35  ;;  %v437_v40 = vadd.f32 %v432_v37, %v376_v31  ;;  %v660_v41 = vpop.f32.mrb[7].mxu0 }
 0x20c   : > { %v626_v42 = vmul.f32 -1.442695, %v450_v39  ;;  %v451_v43 = vadd.f32 %v448_v38, %v437_v40 }
 0x20e   : > { %722 = vpow2.f32 %v626_v42  ;;  %v627_v44 = vmul.f32 -1.442695, %v451_v43 }
 0x210   : > { %724 = vpow2.f32 %v627_v44 }
 0x218   : > { %v723_v45 = vpop.eup %722 }
 0x219   : > { %v458_v46 = vadd.f32 1.0, %v723_v45 }
 0x21a   : > { %v725_v47 = vpop.eup %724 }
 0x21b   : > { %726 = vrcp.f32 %v458_v46  ;;  %v459_v48 = vadd.f32 1.0, %v725_v47 }
 0x21d   : > { %728 = vrcp.f32 %v459_v48 }
 0x225   : > { %v727_v49 = vpop.eup %726 }
 0x226   : > { %v464_v51 = vmul.f32 %v727_v49, %v450_v39 }
 0x227   : > { %v729_v50 = vpop.eup %728 }
 0x228   : > { %v465_v52 = vmul.f32 %v729_v50, %v451_v43 }
 0x22a   : > { %v466_v53 = vpack.c.bf16 %v465_v52, %v464_v51 }
 0x22c   : > { %662 = vmatpush3.bf16.msra.mxu1 %v466_v53 }
 0x22f   : > { %664 = vmatmul.mubr.msk.bf16.vlgmr.msra.gmra.mrb[4].mxu1 %vm474_vm6, %v467_v54 }
 0x302   : > { %v512_v56 = vpop.f32.mrb[4].mxu1 }
 0x303   : > { %v513_v57 = vadd.f32 %v512_v56, %v472_v55  ;;  %v665_v58 = vpop.f32.mrb[5].mxu1 }
 0x304   : > { %v515_v59 = vpop.f32.mrb[6].mxu1 }
 0x305   : > { %v518_v60 = vadd.f32 %v513_v57, %v887_v1  ;;  %v666_v61 = vpop.f32.mrb[7].mxu1 }
 0x307   : > { %519 = vst.msk [vmem:[%s230_s14] sm:$0xff] %vm474_vm6, %v518_v60 }
 0x308   : > { %743 = shalt.err (!%p740_p3)
}
 0x309   : > { %s744_s7 = scalar_lea.hbm %s927_s23, 128  ;;  %s748_s10 = scalar_lea.hbm %s975_s5, 256 }
 0x30a   : > { %p745_p4 = scmp.ne.s32.totalorder %s927_s23, %s744_s7  ;;  %p749_p9 = scmp.lt.u32.totalorder %s927_s23, %s975_s5 }
 0x30b   : > { %p750_p10 = scmp.lt.u32.totalorder %s748_s10, %s744_s7  ;;  %p752_p12 = scmp.lt.u32.totalorder %s744_s7, %s927_s23 }
 0x30c   : > { %p746_p7 = pnand %p745_p4, %p869_p5 }
 0x30d   : > { %p751_p11 = por %p750_p10, %p749_p9 }
 0x30e   : > { %p747_p8 = pneg %p746_p7 }
 0x30f   : > { %p753_p13 = por %p752_p12, %p751_p11 }
 0x311   : > { %p754_p0 = pnand %p753_p13, %p747_p8 }
 0x313   : > { %757 = shalt.err (!%p754_p0)
}
 0x314   : > { %667 = dma.vmem_to_hbm [thread:$0]  (%p869_p5), %s929_s15, 128, %s927_s23, %s521_s22  }
 0x315 PF: > { %p673_p1 = scmp.ge.s32.totalorder %s792_s21, 2  ;;  %s546_s13 = sand.u32 1, %s780_s18  }
 0x316   : > { %s547_s14 = scalar_lea.sflag [#allocation4], %s546_s13 }
 0x317   : > { %p670_p2 = pnand %p673_p1, %p873_p6 }
 0x319   : > { %775 = dma.done.wait (!%p670_p2), %s547_s14, 128  }
 0x31a   : > { %777 = vsyncadd (!%p670_p2), %s547_s14, 4294967168  ;;  %p15_p3 = scmp.ge.s32.totalorder %s856_s24, 4   ;;  %s978_s18 = smov %s784_s19 }
 0x31b   : > { %s979_s19 = smov %s788_s20  ;;  %s980_s20 = smov %s867_s27 }
 0x31c   : > { %s981_s21 = smov %s856_s24  ;;  %17 = sbr.rel (!%p15_p3) target bundleno = 3 (0x3), region = 80 }
 0x323   :  { %552 = vsyncpa [#allocation4], 1 }
 0x324   :  { %554 = vsyncpa [#allocation4 + $0x1], 1 }

</bundles_post_ra>
